<compile_context>
chip_gen: v5e
topology: v5e:2x2
jax: 0.10.0
libtpu: 0.0.40
codegen_flags: <defaults>
</compile_context>

<pallas_src>
import jax
import jax.numpy as jnp
from jax.experimental import pallas as pl
from jax.experimental.pallas import tpu as pltpu


def rbf_policy_kernel(x_ref, c_ref, scale_ref, w_ref, b_ref, o_ref):
    x = x_ref[...].astype(jnp.float32)          # (D, TB)   batch on lanes
    c = c_ref[...]                              # (K, D)    f32 centers
    D = x.shape[0]

    # Direct squared distance on the VPU (static unroll over tiny D):
    #   r[k, b] = sum_d (x[d, b] - C[k, d])^2          -> (K, TB), r >= 0.
    r = None
    for d in range(D):
        diff = x[d:d + 1, :] - c[:, d:d + 1]    # (1,TB) - (K,1) -> (K, TB)
        sq = diff * diff
        r = sq if r is None else r + sq

    # scale = -0.5 / |sigma^2| (per-kernel column, precomputed in the wrapper).
    phi = jnp.exp(r * scale_ref[...])           # (K, TB)

    # Output projection on the VPU/XLU (A and K are tiny -> MXU would idle):
    #   out[a, :] = sum_k w_eff[k, a] * phi[k, :]
    A = w_ref.shape[1]
    rows = []
    for a in range(A):
        wa = w_ref[:, a:a + 1]                  # (K, 1), lane-broadcast
        rows.append(jnp.sum(wa * phi, axis=0, keepdims=True))   # (1, TB)
    out = jnp.concatenate(rows, axis=0) + b_ref[...]            # (A, TB)
    o_ref[...] = out.astype(o_ref.dtype)


def _pick_batch_tile(B):
    """Batch maps to lanes: tile must be a multiple of 128 (or equal to B when
    B < 128).  Capped at 1024 for VMEM headroom on all generations, and sized
    so the grid has >= 2 iterations when possible (v7x has 2 TensorCores)."""
    if B <= 128:
        return B
    half = pl.cdiv(B, 2)
    tb = pl.cdiv(half, 128) * 128
    return min(tb, 1024)


def determ_policy_forward(obs, C, sigma_square, w, b, act_high_lim, act_low_lim):
    """obs: (B, obs_dim).  Parameters in PyTorch layout:
       C (1, K, obs_dim), sigma_square (1, K), w (1, act_dim, K), b (1, act_dim, 1).
       Returns actions (B, act_dim), float32."""
    B, D = obs.shape
    K = C.shape[1]
    A = w.shape[1]

    # --- trace-time parameter plumbing (parameters only: free) ---------------
    c_kd = C[0].astype(jnp.float32)                                       # (K, D)
    scale = (-0.5 / jnp.abs(sigma_square.astype(jnp.float32))).reshape(K, 1)

    act_scale = ((act_high_lim - act_low_lim) * 0.5).astype(jnp.float32)  # (A,)
    act_bias = ((act_high_lim + act_low_lim) * 0.5).astype(jnp.float32)   # (A,)
    # Fold the action-limit affine into the output weights / bias.
    w_eff = w[0].astype(jnp.float32).T * act_scale[None, :]               # (K, A)
    b_eff = (b[0, :, 0].astype(jnp.float32) * act_scale + act_bias)[:, None]  # (A, 1)

    # Batch on lanes: present obs as (D, B) (dtype preserved; cast in-kernel),
    # produce (A, B) and transpose back in the wrapper.
    obs_t = obs.T                                                          # (D, B)

    tb = _pick_batch_tile(B)
    grid = (pl.cdiv(B, tb),)

    param_spec = lambda shape: pl.BlockSpec(shape, lambda i: (0, 0))

    out_t = pl.pallas_call(
        rbf_policy_kernel,
        out_shape=jax.ShapeDtypeStruct((A, B), jnp.float32),
        grid=grid,
        in_specs=[
            pl.BlockSpec((D, tb), lambda i: (0, i)),   # obs tile, batch on lanes
            param_spec((K, D)),                        # centers (VMEM-resident)
            param_spec((K, 1)),                        # -0.5 / |sigma^2|
            param_spec((K, A)),                        # w_eff (action scale folded)
            param_spec((A, 1)),                        # b_eff
        ],
        out_specs=pl.BlockSpec((A, tb), lambda i: (0, i)),
        compiler_params=pltpu.CompilerParams(
            dimension_semantics=("parallel",)),
    )(obs_t, c_kd, scale, w_eff, b_eff)

    return out_t.T                                                         # (B, A)


def determ_policy_reference(obs, C, sigma_square, w, b, act_high_lim, act_low_lim):
    # Pure-JAX mirror of the PyTorch module.
    r = jnp.sum((obs[:, None, :] - C) ** 2, axis=-1)                    # (B, K)
    phi = jnp.exp(-r / (2.0 * jnp.abs(sigma_square)))[..., None]        # (B, K, 1)
    pi = (jnp.matmul(w, phi) + b)[..., 0]                               # (B, A)
    return (act_high_lim - act_low_lim) / 2.0 * pi + (act_high_lim + act_low_lim) / 2.0


if __name__ == "__main__":
    # Small shapes consistent with DetermPolicy: obs_dim, act_dim, num_kernel.
    obs_dim, act_dim, num_kernel = 6, 2, 32

    key = jax.random.PRNGKey(0)
    k_obs, k_c, k_sig, k_w, k_b, k_obs2 = jax.random.split(key, 6)

    # Parameters in the PyTorch __init__ layouts.
    C = jax.random.normal(k_c, (1, num_kernel, obs_dim), dtype=jnp.float32)
    sigma_square = jnp.abs(jax.random.normal(k_sig, (1, num_kernel), dtype=jnp.float32)) + 0.1
    w = jax.random.normal(k_w, (1, act_dim, num_kernel), dtype=jnp.float32)
    b = jax.random.normal(k_b, (1, act_dim, 1), dtype=jnp.float32)

    act_high_lim = jnp.array([1.0, 2.0], dtype=jnp.float32)
    act_low_lim = jnp.array([-1.0, -0.5], dtype=jnp.float32)

    # Case 1: small batch (single block).
    B = 8
    obs = jax.random.normal(k_obs, (B, obs_dim), dtype=jnp.float32)
    out = determ_policy_forward(obs, C, sigma_square, w, b, act_high_lim, act_low_lim)
    out = jax.block_until_ready(out)
    ref = determ_policy_reference(obs, C, sigma_square, w, b, act_high_lim, act_low_lim)
    assert out.shape == (B, act_dim)
    assert jnp.allclose(out, ref, atol=1e-4, rtol=1e-4), (out, ref)

    # Case 2: ragged batch (exercises cdiv tiling / multi-step parallel grid).
    B2 = 260
    obs2 = jax.random.normal(k_obs2, (B2, obs_dim), dtype=jnp.float32)
    out2 = determ_policy_forward(obs2, C, sigma_square, w, b, act_high_lim, act_low_lim)
    out2 = jax.block_until_ready(out2)
    ref2 = determ_policy_reference(obs2, C, sigma_square, w, b, act_high_lim, act_low_lim)
    assert out2.shape == (B2, act_dim)
    assert jnp.allclose(out2, ref2, atol=1e-4, rtol=1e-4)

    print("KERNEL_OK")
</pallas_src>

<mosaic_0001>
module attributes {stable_mosaic.version = 11 : i64} {
  func.func @rbf_policy_kernel(%arg0: i32, %arg1: memref<6x8xf32, #tpu.memory_space<vmem>>, %arg2: memref<32x6xf32, #tpu.memory_space<vmem>>, %arg3: memref<32x1xf32, #tpu.memory_space<vmem>>, %arg4: memref<32x2xf32, #tpu.memory_space<vmem>>, %arg5: memref<2x1xf32, #tpu.memory_space<vmem>>, %arg6: memref<2x8xf32, #tpu.memory_space<vmem>>) attributes {dimension_semantics = [#tpu.dimension_semantics<parallel>], iteration_bounds = array<i64: 1>, scalar_prefetch = 0 : i64, scratch_operands = 0 : i64, tpu.core_type = #tpu.core_type<tc>, window_params = [{transform_indices = @transform_0, window_bounds = array<i64: 6, 8>}, {pipeline_mode = #tpu.pipeline_mode<synchronous>, transform_indices = @transform_1, window_bounds = array<i64: 32, 6>}, {pipeline_mode = #tpu.pipeline_mode<synchronous>, transform_indices = @transform_2, window_bounds = array<i64: 32, 1>}, {pipeline_mode = #tpu.pipeline_mode<synchronous>, transform_indices = @transform_3, window_bounds = array<i64: 32, 2>}, {pipeline_mode = #tpu.pipeline_mode<synchronous>, transform_indices = @transform_4, window_bounds = array<i64: 2, 1>}, {transform_indices = @transform_5, window_bounds = array<i64: 2, 8>}]} {
    %c0 = arith.constant 0 : index
    %c0_0 = arith.constant 0 : index
    %0 = vector.load %arg1[%c0, %c0_0] : memref<6x8xf32, #tpu.memory_space<vmem>>, vector<6x8xf32>
    %c0_1 = arith.constant 0 : index
    %c0_2 = arith.constant 0 : index
    %1 = vector.load %arg2[%c0_1, %c0_2] : memref<32x6xf32, #tpu.memory_space<vmem>>, vector<32x6xf32>
    %2 = vector.extract_strided_slice %0 {offsets = [0, 0], sizes = [1, 8], strides = [1, 1]} : vector<6x8xf32> to vector<1x8xf32>
    %3 = vector.extract_strided_slice %1 {offsets = [0, 0], sizes = [32, 1], strides = [1, 1]} : vector<32x6xf32> to vector<32x1xf32>
    %4 = vector.broadcast %2 : vector<1x8xf32> to vector<32x8xf32>
    %5 = vector.broadcast %3 : vector<32x1xf32> to vector<32x8xf32>
    %6 = arith.subf %4, %5 : vector<32x8xf32>
    %7 = arith.mulf %6, %6 : vector<32x8xf32>
    %8 = vector.extract_strided_slice %0 {offsets = [1, 0], sizes = [1, 8], strides = [1, 1]} : vector<6x8xf32> to vector<1x8xf32>
    %9 = vector.extract_strided_slice %1 {offsets = [0, 1], sizes = [32, 1], strides = [1, 1]} : vector<32x6xf32> to vector<32x1xf32>
    %10 = vector.broadcast %8 : vector<1x8xf32> to vector<32x8xf32>
    %11 = vector.broadcast %9 : vector<32x1xf32> to vector<32x8xf32>
    %12 = arith.subf %10, %11 : vector<32x8xf32>
    %13 = arith.mulf %12, %12 : vector<32x8xf32>
    %14 = arith.addf %7, %13 : vector<32x8xf32>
    %15 = vector.extract_strided_slice %0 {offsets = [2, 0], sizes = [1, 8], strides = [1, 1]} : vector<6x8xf32> to vector<1x8xf32>
    %16 = vector.extract_strided_slice %1 {offsets = [0, 2], sizes = [32, 1], strides = [1, 1]} : vector<32x6xf32> to vector<32x1xf32>
    %17 = vector.broadcast %15 : vector<1x8xf32> to vector<32x8xf32>
    %18 = vector.broadcast %16 : vector<32x1xf32> to vector<32x8xf32>
    %19 = arith.subf %17, %18 : vector<32x8xf32>
    %20 = arith.mulf %19, %19 : vector<32x8xf32>
    %21 = arith.addf %14, %20 : vector<32x8xf32>
    %22 = vector.extract_strided_slice %0 {offsets = [3, 0], sizes = [1, 8], strides = [1, 1]} : vector<6x8xf32> to vector<1x8xf32>
    %23 = vector.extract_strided_slice %1 {offsets = [0, 3], sizes = [32, 1], strides = [1, 1]} : vector<32x6xf32> to vector<32x1xf32>
    %24 = vector.broadcast %22 : vector<1x8xf32> to vector<32x8xf32>
    %25 = vector.broadcast %23 : vector<32x1xf32> to vector<32x8xf32>
    %26 = arith.subf %24, %25 : vector<32x8xf32>
    %27 = arith.mulf %26, %26 : vector<32x8xf32>
    %28 = arith.addf %21, %27 : vector<32x8xf32>
    %29 = vector.extract_strided_slice %0 {offsets = [4, 0], sizes = [1, 8], strides = [1, 1]} : vector<6x8xf32> to vector<1x8xf32>
    %30 = vector.extract_strided_slice %1 {offsets = [0, 4], sizes = [32, 1], strides = [1, 1]} : vector<32x6xf32> to vector<32x1xf32>
    %31 = vector.broadcast %29 : vector<1x8xf32> to vector<32x8xf32>
    %32 = vector.broadcast %30 : vector<32x1xf32> to vector<32x8xf32>
    %33 = arith.subf %31, %32 : vector<32x8xf32>
    %34 = arith.mulf %33, %33 : vector<32x8xf32>
    %35 = arith.addf %28, %34 : vector<32x8xf32>
    %36 = vector.extract_strided_slice %0 {offsets = [5, 0], sizes = [1, 8], strides = [1, 1]} : vector<6x8xf32> to vector<1x8xf32>
    %37 = vector.extract_strided_slice %1 {offsets = [0, 5], sizes = [32, 1], strides = [1, 1]} : vector<32x6xf32> to vector<32x1xf32>
    %38 = vector.broadcast %36 : vector<1x8xf32> to vector<32x8xf32>
    %39 = vector.broadcast %37 : vector<32x1xf32> to vector<32x8xf32>
    %40 = arith.subf %38, %39 : vector<32x8xf32>
    %41 = arith.mulf %40, %40 : vector<32x8xf32>
    %42 = arith.addf %35, %41 : vector<32x8xf32>
    %c0_3 = arith.constant 0 : index
    %c0_4 = arith.constant 0 : index
    %43 = vector.load %arg3[%c0_3, %c0_4] : memref<32x1xf32, #tpu.memory_space<vmem>>, vector<32x1xf32>
    %44 = vector.broadcast %43 : vector<32x1xf32> to vector<32x8xf32>
    %45 = arith.mulf %42, %44 : vector<32x8xf32>
    %46 = math.exp %45 : vector<32x8xf32>
    %c0_5 = arith.constant 0 : index
    %c0_6 = arith.constant 0 : index
    %47 = vector.load %arg4[%c0_5, %c0_6] : memref<32x2xf32, #tpu.memory_space<vmem>>, vector<32x1xf32>
    %48 = vector.broadcast %47 : vector<32x1xf32> to vector<32x8xf32>
    %49 = arith.mulf %48, %46 : vector<32x8xf32>
    %cst = arith.constant dense<0.000000e+00> : vector<8xf32>
    %50 = vector.multi_reduction <add>, %49, %cst [0] : vector<32x8xf32> to vector<8xf32>
    %51 = vector.shape_cast %50 : vector<8xf32> to vector<1x8xf32>
    %c0_7 = arith.constant 0 : index
    %c1 = arith.constant 1 : index
    %52 = vector.load %arg4[%c0_7, %c1] : memref<32x2xf32, #tpu.memory_space<vmem>>, vector<32x1xf32>
    %53 = vector.broadcast %52 : vector<32x1xf32> to vector<32x8xf32>
    %54 = arith.mulf %53, %46 : vector<32x8xf32>
    %cst_8 = arith.constant dense<0.000000e+00> : vector<8xf32>
    %55 = vector.multi_reduction <add>, %54, %cst_8 [0] : vector<32x8xf32> to vector<8xf32>
    %56 = vector.shape_cast %55 : vector<8xf32> to vector<1x8xf32>
    %57 = tpu.concatenate %51, %56 in 0 : vector<1x8xf32>, vector<1x8xf32> -> vector<2x8xf32>
    %c0_9 = arith.constant 0 : index
    %c0_10 = arith.constant 0 : index
    %58 = vector.load %arg5[%c0_9, %c0_10] : memref<2x1xf32, #tpu.memory_space<vmem>>, vector<2x1xf32>
    %59 = vector.broadcast %58 : vector<2x1xf32> to vector<2x8xf32>
    %60 = arith.addf %57, %59 : vector<2x8xf32>
    %c0_11 = arith.constant 0 : index
    %c0_12 = arith.constant 0 : index
    %61 = vector.load %arg6[%c0_11, %c0_12] : memref<2x8xf32, #tpu.memory_space<vmem>>, vector<2x8xf32>
    tpu.vector_store %arg6[%c0_11, %c0_12], %60 {strides = array<i32>} : memref<2x8xf32, #tpu.memory_space<vmem>>, vector<2x8xf32>,
    return
  }
  func.func @transform_0(%arg0: i32) -> (i32, i32) {
    %c0_i32 = arith.constant 0 : i32
    %c0_i32_0 = arith.constant 0 : i32
    return %c0_i32, %arg0 : i32, i32
  }
  func.func @transform_1(%arg0: i32) -> (i32, i32) {
    %c0_i32 = arith.constant 0 : i32
    %c0_i32_0 = arith.constant 0 : i32
    %c0_i32_1 = arith.constant 0 : i32
    return %c0_i32, %c0_i32_0 : i32, i32
  }
  func.func @transform_2(%arg0: i32) -> (i32, i32) {
    %c0_i32 = arith.constant 0 : i32
    %c0_i32_0 = arith.constant 0 : i32
    %c0_i32_1 = arith.constant 0 : i32
    return %c0_i32, %c0_i32_0 : i32, i32
  }
  func.func @transform_3(%arg0: i32) -> (i32, i32) {
    %c0_i32 = arith.constant 0 : i32
    %c0_i32_0 = arith.constant 0 : i32
    %c0_i32_1 = arith.constant 0 : i32
    return %c0_i32, %c0_i32_0 : i32, i32
  }
  func.func @transform_4(%arg0: i32) -> (i32, i32) {
    %c0_i32 = arith.constant 0 : i32
    %c0_i32_0 = arith.constant 0 : i32
    %c0_i32_1 = arith.constant 0 : i32
    return %c0_i32, %c0_i32_0 : i32, i32
  }
  func.func @transform_5(%arg0: i32) -> (i32, i32) {
    %c0_i32 = arith.constant 0 : i32
    %c0_i32_0 = arith.constant 0 : i32
    return %c0_i32, %arg0 : i32, i32
  }
}

</mosaic_0001>

<bundles_post_ra>
// kernel: tpu_custom_call.1
= control target key start
LH: loop header
LB: loop body
LE: loop exit
PB: predicated region body
PF: predicated region fallthrough
CT: control target
= control target key end

     0   :  { %v401_v2 = vmov 0   ;;  %s503_s0 = inlined_call_operand.vmem [shape: f32[6,8], index: 0, kind: input, shape index: {}]   ;;  %s504_s1 = inlined_call_operand.vmem [shape: f32[32,6], index: 1, kind: input, shape index: {}]   ;;  %s505_s2 = inlined_call_operand.vmem [shape: f32[32,1], index: 2, kind: input, shape index: {}]   ;;  %s506_s3 = inlined_call_operand.vmem [shape: f32[32,2], index: 3, kind: input, shape index: {}]   ;;  %s507_s4 = inlined_call_operand.vmem [shape: f32[2,1], index: 4, kind: input, shape index: {}]   ;;  %s508_s5 = inlined_call_operand.hbm [shape: f32[2,8], index: 5, kind: output, shape index: {}]  }
   0x1   :  { %v24_v0 = vld [vmem:[%s504_s1 + $0x10] sm:$0xff]  ;;  %v22_v1 = vld [vmem:[%s504_s1] sm:$0xff]  ;;  %346 = vset.pattern.permute.xlu1 %v401_v2  ;;  %345 = vset.pattern.permute.xlu0 %v401_v2 }
   0x2   :  { %10 = vsyncpa [#allocation3], 0  ;;  %39 = vperm.xlu1 %346, %v24_v0   ;;  %29 = vperm.xlu0 %345, %v22_v1   ;;  %v402_v3 = vmov 1   ;;  %v25_v4 = vld [vmem:[%s504_s1 + $0x18] sm:$0xff]  ;;  %v23_v5 = vld [vmem:[%s504_s1 + $0x8] sm:$0xff]  ;;  %v403_v6 = vmov 2  }
   0x3   :  { %347 = vset.pattern.permute.xlu2 %v402_v3  ;;  %v404_v7 = vmov 3   ;;  %v405_v8 = vmov 4   ;;  %v406_v9 = vmov 5   ;;  %v202_v10 = vld [vmem:[%s505_s2 + $0x10] sm:$0xff]  ;;  %v237_v11 = vld [vmem:[%s506_s3 + $0x8] sm:$0xff]  ;;  %v200_v12 = vld [vmem:[%s505_s2] sm:$0xff] }
   0x4   :  { %57 = vperm.xlu2 %347, %v22_v1   ;;  %v201_v13 = vld [vmem:[%s505_s2 + $0x8] sm:$0xff]  ;;  %v203_v14 = vld [vmem:[%s505_s2 + $0x18] sm:$0xff]  ;;  %v236_v15 = vld [vmem:[%s506_s3] sm:$0xff]  ;;  %vm264_vm0 = vcmask 64512   ;;  %vm311_vm1 = vcmask 1040384   ;;  %s329_s20 = sshll.u32 %s508_s5, 4  ;;  %s330_s20 = int_to_ptr.hbm [resolvable:$true] %s329_s20 }
   0x5   :  { %v313_v17 = vld [vmem:[%s507_s4] sm:$0x3]  ;;  %v238_v18 = vld [vmem:[%s506_s3 + $0x10] sm:$0xff]  ;;  %v239_v20 = vld [vmem:[%s506_s3 + $0x18] sm:$0xff]  ;;  %vm320_vm2 = vcmask 58368  }
   0x6   :  { %v21_v36 = vld [vmem:[%s503_s0] sm:$0x3f]  ;;  %s407_s0 = smov [#allocation2]  }
   0x7   :  { %v55_v38 = vperm.slane %v21_v36, 1  ;;  %v26_v39 = vperm.slane %v21_v36, 0  ;;  %v84_v40 = vperm.slane %v21_v36, 2  ;;  %v113_v44 = vperm.slane %v21_v36, 3  ;;  %s327_s17 = sshll.u32 %s407_s0, 4  ;;  %s328_s17 = int_to_ptr.vmem [resolvable:$true] %s327_s17 }
   0x8   :  { %v142_v52 = vperm.slane %v21_v36, 4  ;;  %v171_v62 = vperm.slane %v21_v36, 5 }
   0xa   :  { %44 = vperm.xlu1 %346, %v25_v4   ;;  %34 = vperm.xlu0 %345, %v23_v5  }
   0xc   :  { %61 = vperm.xlu2 %347, %v23_v5  }
  0x12   :  { %349 = vset.pattern.permute.xlu1 %v402_v3  ;;  %348 = vset.pattern.permute.xlu0 %v402_v3 }
  0x13   :  { %69 = vperm.xlu1 %349, %v25_v4   ;;  %65 = vperm.xlu0 %348, %v24_v0  }
  0x14   :  { %350 = vset.pattern.permute.xlu2 %v403_v6 }
  0x15   :  { %86 = vperm.xlu2 %350, %v22_v1  }
  0x1b   :  { %351 = vset.pattern.permute.xlu1 %v403_v6  ;;  %352 = vset.pattern.permute.xlu0 %v403_v6 }
  0x1c   :  { %90 = vperm.xlu1 %351, %v23_v5   ;;  %98 = vperm.xlu0 %352, %v25_v4  }
  0x1d   :  { %94 = vperm.xlu2 %350, %v24_v0  }
  0x24   :  { %353 = vset.pattern.permute.xlu1 %v404_v7  ;;  %355 = vset.pattern.permute.xlu0 %v405_v8 }
  0x25   :  { %115 = vperm.xlu1 %353, %v22_v1   ;;  %354 = vset.pattern.permute.xlu2 %v404_v7 }
  0x26   :  { %119 = vperm.xlu2 %354, %v23_v5   ;;  %144 = vperm.xlu0 %355, %v22_v1  }
  0x2d   :  { %123 = vperm.xlu1 %353, %v24_v0  }
  0x2e   :  { %127 = vperm.xlu2 %354, %v25_v4   ;;  %359 = vset.pattern.permute.xlu0 %v406_v9 }
  0x2f   :  { %177 = vperm.xlu0 %359, %v23_v5  }
  0x35   :  { %356 = vset.pattern.permute.xlu1 %v405_v8 }
  0x36   :  { %148 = vperm.xlu1 %356, %v23_v5   ;;  %357 = vset.pattern.permute.xlu2 %v405_v8 }
  0x37   :  { %152 = vperm.xlu2 %357, %v24_v0   ;;  %363 = vset.pattern.permute.xlu0 %v401_v2 }
  0x38   :  { %216 = vperm.xlu0 %363, %v202_v10  }
  0x3e   :  { %156 = vperm.xlu1 %356, %v25_v4  }
  0x3f   :  { %358 = vset.pattern.permute.xlu2 %v406_v9 }
  0x40   :  { %173 = vperm.xlu2 %358, %v22_v1   ;;  %365 = vset.pattern.permute.xlu0 %v402_v3 }
  0x41   :  { %283 = vperm.xlu0 %365, %v237_v11  }
  0x46   :  { %360 = vset.pattern.permute.xlu1 %v406_v9 }
  0x47   :  { %181 = vperm.xlu1 %360, %v24_v0  }
  0x48   :  { %185 = vperm.xlu2 %358, %v25_v4  }
  0x49   :  { %366 = vset.pattern.permute.xlu0 %v401_v2 }
  0x4a   :  { %316 = vperm.xlu0 %366, %v313_v17  }
  0x4f   :  { %361 = vset.pattern.permute.xlu1 %v401_v2 }
  0x50   :  { %206 = vperm.xlu1 %361, %v200_v12   ;;  %362 = vset.pattern.permute.xlu2 %v401_v2 }
  0x51   :  { %211 = vperm.xlu2 %362, %v201_v13  }
  0x58   :  { %221 = vperm.xlu1 %361, %v203_v14  }
  0x59   :  { %242 = vperm.xlu2 %362, %v236_v15  }
  0x5e   :  { %v58_v16 = vpop.permute.xlu2 %57 }
  0x5f   :  { %v72_v53 = vsub.f32 %v55_v38, %v58_v16 }
  0x60   :  { %247 = vperm.xlu1 %361, %v237_v11  }
  0x61   :  { %364 = vset.pattern.permute.xlu2 %v402_v3  ;;  %v76_v63 = vmul.f32 %v72_v53, %v72_v53 }
  0x62   :  { %279 = vperm.xlu2 %364, %v236_v15  }
  0x66   :  { %v62_v19 = vpop.permute.xlu2 %61 }
  0x67   :  { %v73_v43 = vsub.f32 %v55_v38, %v62_v19 }
  0x68   :  { %252 = vperm.xlu1 %361, %v238_v18  }
  0x69   :  { %v77_v49 = vmul.f32 %v73_v43, %v73_v43 }
  0x6a   :  { %287 = vperm.xlu2 %364, %v238_v18  }
  0x6f   :  { %v87_v21 = vpop.permute.xlu2 %86 }
  0x70   :  { %257 = vperm.xlu1 %361, %v239_v20   ;;  %v101_v1 = vsub.f32 %v84_v40, %v87_v21 }
  0x72   :  { %291 = vperm.xlu2 %364, %v239_v20   ;;  %v105_v13 = vmul.f32 %v101_v1, %v101_v1 }
  0x74   :  { %v40_v22 = vpop.permute.xlu1 %39  ;;  %v30_v25 = vpop.permute.xlu0 %29 }
  0x75   :  { %v47_v55 = vsub.f32 %v26_v39, %v30_v25  ;;  %v49_v58 = vsub.f32 %v26_v39, %v40_v22 }
  0x77   :  { %v95_v23 = vpop.permute.xlu2 %94  ;;  %v51_v2 = vmul.f32 %v47_v55, %v47_v55  ;;  %v53_v6 = vmul.f32 %v49_v58, %v49_v58 }
  0x78   :  { %v103_v7 = vsub.f32 %v84_v40, %v95_v23 }
  0x79   :  { %v80_v14 = vadd.f32 %v76_v63, %v51_v2 }
  0x7a   :  { %v107_v17 = vmul.f32 %v103_v7, %v103_v7 }
  0x7b   :  { %v109_v23 = vadd.f32 %v105_v13, %v80_v14 }
  0x7c   :  { %v477_v24 = vpop.permute.xlu1 %44  ;;  %v35_v28 = vpop.permute.xlu0 %34 }
  0x7d   :  { %v48_v41 = vsub.f32 %v26_v39, %v35_v28 }
  0x7f   :  { %v52_v47 = vmul.f32 %v48_v41, %v48_v41 }
  0x80   :  { %v120_v26 = vpop.permute.xlu2 %119 }
  0x81   :  { %v131_v50 = vsub.f32 %v113_v44, %v120_v26  ;;  %v81_v56 = vadd.f32 %v77_v49, %v52_v47  ;;  %v50_v26 = vsub.f32 %v26_v39, %v477_v24 }
  0x83   :  { %v135_v60 = vmul.f32 %v131_v50, %v131_v50 }
  0x85   :  { %v70_v27 = vpop.permute.xlu1 %69  ;;  %v66_v31 = vpop.permute.xlu0 %65 }
  0x86   :  { %v74_v54 = vsub.f32 %v55_v38, %v66_v31  ;;  %v75_v20 = vsub.f32 %v55_v38, %v70_v27 }
  0x88   :  { %v479_v29 = vpop.permute.xlu2 %127  ;;  %v78_v0 = vmul.f32 %v74_v54, %v74_v54 }
  0x89   :  { %v133_v27 = vsub.f32 %v113_v44, %v479_v29 }
  0x8a   :  { %v82_v12 = vadd.f32 %v78_v0, %v53_v6 }
  0x8b   :  { %v137_v53 = vmul.f32 %v133_v27, %v133_v27 }
  0x8c   :  { %v111_v25 = vadd.f32 %v107_v17, %v82_v12 }
  0x8e   :  { %v91_v30 = vpop.permute.xlu1 %90  ;;  %v99_v34 = vpop.permute.xlu0 %98 }
  0x8f   :  { %v102_v45 = vsub.f32 %v84_v40, %v91_v30  ;;  %v104_v28 = vsub.f32 %v84_v40, %v99_v34 }
  0x91   :  { %v153_v32 = vpop.permute.xlu2 %152  ;;  %v106_v51 = vmul.f32 %v102_v45, %v102_v45  ;;  %v108_v38 = vmul.f32 %v104_v28, %v104_v28 }
  0x92   :  { %v161_v18 = vsub.f32 %v142_v52, %v153_v32 }
  0x93   :  { %v110_v61 = vadd.f32 %v106_v51, %v81_v56 }
  0x95   :  { %v139_v11 = vadd.f32 %v135_v60, %v110_v61 }
  0x97   :  { %v116_v33 = vpop.permute.xlu1 %115 }
  0x98   :  { %v145_v42 = vpop.permute.xlu0 %144  ;;  %v130_v10 = vsub.f32 %v113_v44, %v116_v33  ;;  %v165_v33 = vmul.f32 %v161_v18, %v161_v18 }
  0x99   :  { %v159_v22 = vsub.f32 %v142_v52, %v145_v42 }
  0x9a   :  { %v481_v35 = vpop.permute.xlu2 %173  ;;  %v134_v21 = vmul.f32 %v130_v10, %v130_v10 }
  0x9b   :  { %v163_v43 = vmul.f32 %v159_v22, %v159_v22  ;;  %v188_v45 = vsub.f32 %v171_v62, %v481_v35 }
  0x9c   :  { %v138_v41 = vadd.f32 %v134_v21, %v109_v23 }
  0x9d   :  { %v192_v40 = vmul.f32 %v188_v45, %v188_v45 }
  0x9e   :  { %v167_v39 = vadd.f32 %v163_v43, %v138_v41 }
  0x9f   :  { %v124_v37 = vpop.permute.xlu1 %123 }
  0xa0   :  { %v132_v8 = vsub.f32 %v113_v44, %v124_v37  ;;  %v79_v37 = vmul.f32 %v75_v20, %v75_v20  ;;  %v196_v58 = vadd.f32 %v192_v40, %v167_v39 }
  0xa1   :  { %v178_v59 = vpop.permute.xlu0 %177 }
  0xa2   :  { %v486_v46 = vpop.permute.xlu2 %185  ;;  %v189_v4 = vsub.f32 %v171_v62, %v178_v59  ;;  %v136_v19 = vmul.f32 %v132_v8, %v132_v8 }
  0xa3   :  { %v191_v29 = vsub.f32 %v171_v62, %v486_v46 }
  0xa4   :  { %v193_v16 = vmul.f32 %v189_v4, %v189_v4  ;;  %v140_v36 = vadd.f32 %v136_v19, %v111_v25 }
  0xa6   :  { %v169_v49 = vadd.f32 %v165_v33, %v140_v36 }
  0xa8   :  { %v149_v48 = vpop.permute.xlu1 %148 }
  0xa9   :  { %v160_v57 = vsub.f32 %v142_v52, %v149_v48  ;;  %v54_v48 = vmul.f32 %v50_v26, %v50_v26 }
  0xaa   :  { %v217_v56 = vpop.permute.xlu0 %216 }
  0xab   :  { %v164_v3 = vmul.f32 %v160_v57, %v160_v57  ;;  %v212_v5 = vpop.permute.xlu2 %211  ;;  %v83_v34 = vadd.f32 %v79_v37, %v54_v48 }
  0xad   :  { %v168_v15 = vadd.f32 %v164_v3, %v139_v11  ;;  %v112_v54 = vadd.f32 %v108_v38, %v83_v34 }
  0xaf   :  { %v197_v30 = vadd.f32 %v193_v16, %v168_v15  ;;  %v141_v44 = vadd.f32 %v137_v53, %v112_v54 }
  0xb0   :  { %v157_v9 = vpop.permute.xlu1 %156 }
  0xb1   :  { %v225_v42 = vmul.f32 %v212_v5, %v197_v30  ;;  %v162_v50 = vsub.f32 %v142_v52, %v157_v9  ;;  %v195_v52 = vmul.f32 %v191_v29, %v191_v29 }
  0xb3   :  { %v243_v31 = vpop.permute.xlu2 %242  ;;  %v230_v55 = vmul.f32 1.442695, %v225_v42  ;;  %v166_v35 = vmul.f32 %v162_v50, %v162_v50  ;;  %v284_v3 = vpop.permute.xlu0 %283 }
  0xb5   :  { %367 = vpow2.f32 %v230_v55  ;;  %v170_v0 = vadd.f32 %v166_v35, %v141_v44 }
  0xb7   :  { %v199_v4 = vadd.f32 %v195_v52, %v170_v0 }
  0xb9   :  { %v182_v47 = vpop.permute.xlu1 %181 }
  0xba   :  { %v190_v32 = vsub.f32 %v171_v62, %v182_v47 }
  0xbb   :  { %v368_v2 = vpop.eup %367 }
  0xbc   :  { %v194_v24 = vmul.f32 %v190_v32, %v190_v32  ;;  %v280_v59 = vpop.permute.xlu2 %279  ;;  %v295_v9 = vmul.f32 %v368_v2, %v284_v3  ;;  %v317_v50 = vpop.permute.xlu0 %316 }
  0xbe   :  { %v198_v51 = vadd.f32 %v194_v24, %v169_v49  ;;  %v299_v12 = vsel %vm264_vm0, %v295_v9, 0.0 }
  0xc0   :  { %v226_v57 = vmul.f32 %v217_v56, %v198_v51 }
  0xc2   :  { %v232_v60 = vmul.f32 1.442695, %v226_v57  ;;  %v207_v61 = vpop.permute.xlu1 %206 }
  0xc3   :  { %v224_v63 = vmul.f32 %v207_v61, %v196_v58 }
  0xc4   :  { %369 = vpow2.f32 %v232_v60  ;;  %v288_v8 = vpop.permute.xlu2 %287 }
  0xc5   :  { %v228_v1 = vmul.f32 1.442695, %v224_v63 }
  0xc7   :  { %371 = vpow2.f32 %v228_v1 }
  0xca   :  { %v222_v5 = vpop.permute.xlu1 %221  ;;  %v370_v6 = vpop.eup %369 }
  0xcb   :  { %v227_v7 = vmul.f32 %v222_v5, %v199_v4  ;;  %v296_v62 = vmul.f32 %v370_v6, %v288_v8 }
  0xcc   :  { %v292_v25 = vpop.permute.xlu2 %291 }
  0xcd   :  { %v372_v10 = vpop.eup %371  ;;  %v234_v11 = vmul.f32 1.442695, %v227_v7  ;;  %v301_v16 = vsel %vm264_vm0, %v296_v62, 0.0 }
  0xce   :  { %v294_v46 = vmul.f32 %v372_v10, %v280_v59  ;;  %v260_v15 = vmul.f32 %v372_v10, %v243_v31 }
  0xcf   :  { %373 = vpow2.f32 %v234_v11 }
  0xd0   :  { %v298_v13 = vsel %vm264_vm0, %v294_v46, 0.0  ;;  %v265_v21 = vsel %vm264_vm0, %v260_v15, 0.0 }
  0xd1   :  { %v300_v14 = vadd.f32 %v299_v12, %v298_v13 }
  0xd2   :  { %v248_v17 = vpop.permute.xlu1 %247 }
  0xd3   :  { %v302_v18 = vadd.f32 %v301_v16, %v300_v14  ;;  %v261_v19 = vmul.f32 %v368_v2, %v248_v17 }
  0xd5   :  { %v374_v20 = vpop.eup %373  ;;  %v266_v22 = vsel %vm264_vm0, %v261_v19, 0.0 }
  0xd6   :  { %v267_v26 = vadd.f32 %v266_v22, %v265_v21  ;;  %v297_v28 = vmul.f32 %v374_v20, %v292_v25 }
  0xd8   :  { %v303_v23 = vsel %vm264_vm0, %v297_v28, 0.0 }
  0xd9   :  { %v304_v30 = vadd.f32 %v303_v23, %v302_v18 }
  0xda   :  { %v253_v33 = vpop.permute.xlu1 %252 }
  0xdb   :  { %v262_v36 = vmul.f32 %v370_v6, %v253_v33  ;;  %v305_v37 = vrot.slane %v304_v30, 4 }
  0xdd   :  { %v268_v31 = vsel %vm264_vm0, %v262_v36, 0.0  ;;  %v306_v43 = vadd.f32 %v305_v37, %v304_v30 }
  0xde   :  { %v269_v41 = vadd.f32 %v268_v31, %v267_v26 }
  0xdf   :  { %v307_v48 = vrot.slane %v306_v43, 2 }
  0xe1   :  { %v308_v42 = vadd.f32 %v307_v48, %v306_v43 }
  0xe2   :  { %v258_v45 = vpop.permute.xlu1 %257 }
  0xe3   :  { %v263_v47 = vmul.f32 %v374_v20, %v258_v45  ;;  %v309_v39 = vrot.slane %v308_v42, 1 }
  0xe5   :  { %v270_v32 = vsel %vm264_vm0, %v263_v47, 0.0  ;;  %v310_v53 = vadd.f32 %v309_v39, %v308_v42 }
  0xe6   :  { %v271_v27 = vadd.f32 %v270_v32, %v269_v41 }
  0xe8   :  { %v272_v38 = vrot.slane %v271_v27, 4 }
  0xea   :  { %v273_v49 = vadd.f32 %v272_v38, %v271_v27 }
  0xec   :  { %v274_v24 = vrot.slane %v273_v49, 2 }
  0xee   :  { %v275_v34 = vadd.f32 %v274_v24, %v273_v49 }
  0xf0   :  { %v276_v40 = vrot.slane %v275_v34, 1 }
  0xf2   :  { %v277_v51 = vadd.f32 %v276_v40, %v275_v34 }
  0xf4   :  { %v312_v54 = vsel %vm311_vm1, %v277_v51, %v310_v53 }
  0xf5   :  { %v319_v55 = vadd.f32 %v317_v50, %v312_v54 }
  0xf7   :  { %321 = vst.msk [vmem:[#allocation2] sm:$0x3] %vm320_vm2, %v319_v55 }
  0xf8   :  { %332 = dma.vmem_to_hbm [thread:$0]  %s328_s17, 32, %s330_s20, [#allocation3]  }
  0xf9   :  { %399 = dma.done.wait [#allocation3], 32  }
  0xfa   :  { %400 = vsyncadd [#allocation3], 4294967264 }
  0xfb   :  { %337 = vsyncpa [#allocation3], 1 }

</bundles_post_ra>
